<compile_context>
chip_gen: v7x
topology: tpu7x:2x2x1
jax: 0.10.0
libtpu: 0.0.40
codegen_flags: <defaults>
</compile_context>

<pallas_src>
import math

import jax
import jax.numpy as jnp
from jax.experimental import pallas as pl
from jax.experimental.pallas import tpu as pltpu


def _round_up(a, m):
    return ((a + m - 1) // m) * m


def _fused_heads_kernel(x_ref, w_ref, b_ref, o_ref, acc_ref):
    """Computes one (tb, tn) output tile; K (feature) axis is the last grid axis."""
    k = pl.program_id(2)

    @pl.when(k == 0)
    def _():
        acc_ref[...] = jnp.zeros_like(acc_ref)

    # bf16 x bf16 -> f32 accumulation on the MXU.
    acc_ref[...] += jnp.dot(
        x_ref[...], w_ref[...], preferred_element_type=jnp.float32
    )

    @pl.when(k == pl.num_programs(2) - 1)
    def _():
        o_ref[...] = (acc_ref[...] + b_ref[...].astype(jnp.float32)).astype(
            o_ref.dtype
        )


def fused_linear_heads(x, w_all, b_all, *, batch_tile=256, k_tile=512,
                       out_dtype=jnp.float32):
    """Fused multi-head linear: x:[B,F] @ w_all:[F,Cp] + b_all:[1,Cp] -> [B,Cp].

    Cp must be a multiple of 128 (lane-dense stores).  Compute is bf16 on the
    MXU with f32 accumulation; padding rows/columns are zero and are sliced
    off by the caller.
    """
    B, F = x.shape
    Fw, Cp = w_all.shape
    assert F == Fw, (F, Fw)
    assert b_all.shape == (1, Cp), b_all.shape
    assert Cp % 128 == 0, Cp

    # ---- tile selection -------------------------------------------------
    # Batch tile: multiple of 16 (bf16 sublane packing), capped at batch_tile
    # so VMEM stays bounded and large batches give >=2 parallel grid steps
    # (both v7x TensorCores used).
    tb = min(_round_up(batch_tile, 16), _round_up(B, 16))
    Bp = _round_up(B, tb)

    # N (lane) tile: a 128-multiple divisor of Cp, at most 512 lanes.
    if Cp <= 512:
        tn = Cp
    elif Cp % 512 == 0:
        tn = 512
    elif Cp % 256 == 0:
        tn = 256
    else:
        tn = 128

    # K (feature) tile: stream the feature axis when F is large so the
    # pipelined x / W buffers stay bounded.
    if F <= k_tile:
        tk, Fp = F, F
    else:
        tk = k_tile
        Fp = _round_up(F, tk)

    # ---- padding & casts (zero padding never leaks into real outputs) ---
    x16 = x.astype(jnp.bfloat16)
    if (Bp, Fp) != (B, F):
        x16 = jnp.pad(x16, ((0, Bp - B), (0, Fp - F)))
    w16 = w_all.astype(jnp.bfloat16)
    if Fp != F:
        w16 = jnp.pad(w16, ((0, Fp - F), (0, 0)))
    b32 = b_all.astype(jnp.float32)

    grid = (Bp // tb, Cp // tn, Fp // tk)
    ni, nj, nk = grid

    cost = pl.CostEstimate(
        flops=2 * Bp * Fp * Cp,
        transcendentals=0,
        bytes_accessed=int(
            Bp * Fp * 2 * nj        # x re-streamed per N tile (bf16)
            + Fp * Cp * 2 * ni      # W re-streamed per batch tile (bf16)
            + Cp * 4 * ni           # bias (f32)
            + Bp * Cp * 4           # output (f32)
        ),
    )

    # Explicit VMEM budget: double-buffered tiles + f32 accumulator with
    # headroom, clamped safely under v7x's 64 MiB physical VMEM.
    est = (2 * tb * tk * 2 + 2 * tk * tn * 2 + 2 * tn * 4
           + 2 * tb * tn * 4 + tb * tn * 4)
    vmem_limit = int(min(max(4 * est, 32 * 2 ** 20), 48 * 2 ** 20))

    out = pl.pallas_call(
        _fused_heads_kernel,
        out_shape=jax.ShapeDtypeStruct((Bp, Cp), out_dtype),
        grid=grid,
        in_specs=[
            pl.BlockSpec((tb, tk), lambda i, j, k: (i, k)),   # x tile
            pl.BlockSpec((tk, tn), lambda i, j, k: (k, j)),   # fused weights
            pl.BlockSpec((1, tn), lambda i, j, k: (0, j)),    # fused bias
        ],
        out_specs=pl.BlockSpec((tb, tn), lambda i, j, k: (i, j)),
        scratch_shapes=[pltpu.VMEM((tb, tn), jnp.float32)],
        compiler_params=pltpu.CompilerParams(
            dimension_semantics=("parallel", "parallel", "arbitrary"),
            vmem_limit_bytes=vmem_limit,
        ),
        cost_estimate=cost,
    )(x16, w16, b32)

    return out[:B] if Bp != B else out


class MultiTaskHead:
    """JAX/Pallas equivalent of the PyTorch MultiTaskHead (fused forward)."""

    def __init__(self, n_features, n_classes_list, key):
        self.n_features = n_features
        self.n_classes_list = list(n_classes_list)

        bound = 1.0 / math.sqrt(float(n_features))
        ws, bs = [], []
        for n_classes in self.n_classes_list:
            key, kw, kb = jax.random.split(key, 3)
            # Init mimicking nn.Linear default: U(-1/sqrt(F), 1/sqrt(F)).
            w = jax.random.uniform(
                kw, (n_features, n_classes), jnp.float32, -bound, bound
            )
            b = jax.random.uniform(kb, (1, n_classes), jnp.float32, -bound, bound)
            ws.append(w)
            bs.append(b)
        # Keep per-head f32 params for the reference check / inspection.
        self.params = list(zip(ws, bs))

        # Fuse once at init: concat heads, lane-pad C_total to a multiple of 128.
        c_total = sum(self.n_classes_list)
        c_pad = _round_up(max(c_total, 1), 128)
        w_all = jnp.concatenate(ws, axis=1)
        b_all = jnp.concatenate(bs, axis=1)
        if c_pad != c_total:
            # Padded columns are ZERO in both W and b and are never returned.
            w_all = jnp.pad(w_all, ((0, 0), (0, c_pad - c_total)))
            b_all = jnp.pad(b_all, ((0, 0), (0, c_pad - c_total)))
        # Weights stored bf16 (native MXU rate, half the HBM/VMEM traffic);
        # bias stays f32 and is added after f32 accumulation.
        self.w_all = w_all.astype(jnp.bfloat16)
        self.b_all = b_all

        # Per-task column offsets into the fused output.
        offsets = []
        start = 0
        for c in self.n_classes_list:
            offsets.append((start, start + c))
            start += c
        self.offsets = offsets

    def __call__(self, x, return_fused=False):
        y = fused_linear_heads(x, self.w_all, self.b_all)
        if return_fused:
            # Cheapest for downstream consumers: hand back the lane-dense
            # fused slab + (start, end) metadata and skip per-task relayouts.
            return y, self.offsets
        # PyTorch-forward semantics: list of per-task outputs
        # (padding columns dropped here).
        return [y[:, s:e] for (s, e) in self.offsets]


if __name__ == "__main__":
    key = jax.random.PRNGKey(0)
    k_in, k_params = jax.random.split(key)

    batch = 8
    n_features = 32
    n_classes_list = [16, 8, 4]

    x = jax.random.normal(k_in, (batch, n_features), dtype=jnp.float32)

    model = MultiTaskHead(n_features, n_classes_list, k_params)
    outputs = model(x)
    outputs = [jax.block_until_ready(o) for o in outputs]

    # Reference check in plain f32 JAX against the un-fused per-head params.
    # Tolerance loosened because the kernel matmul runs in bf16 (f32 accum).
    refs = [x @ w + b for (w, b) in model.params]
    for o, r, c in zip(outputs, refs, n_classes_list):
        assert o.shape == (batch, c), (o.shape, c)
        assert o.dtype == jnp.float32, o.dtype
        assert jnp.allclose(o, r, atol=5e-2, rtol=5e-2), float(
            jnp.max(jnp.abs(o - r))
        )

    print("KERNEL_OK")
</pallas_src>

<mosaic_0001>
module attributes {stable_mosaic.version = 11 : i64} {
  func.func @_fused_heads_kernel(%arg0: i32, %arg1: i32, %arg2: i32, %arg3: memref<16x32xbf16, #tpu.memory_space<vmem>>, %arg4: memref<32x128xbf16, #tpu.memory_space<vmem>>, %arg5: memref<1x128xf32, #tpu.memory_space<vmem>>, %arg6: memref<16x128xf32, #tpu.memory_space<vmem>>, %arg7: memref<16x128xf32, #tpu.memory_space<vmem>>) attributes {dimension_semantics = [#tpu.dimension_semantics<parallel>, #tpu.dimension_semantics<parallel>, #tpu.dimension_semantics<arbitrary>], iteration_bounds = array<i64: 1, 1, 1>, scalar_prefetch = 0 : i64, scratch_operands = 1 : i64, tpu.core_type = #tpu.core_type<tc>, window_params = [{transform_indices = @transform_0, window_bounds = array<i64: 16, 32>}, {transform_indices = @transform_1, window_bounds = array<i64: 32, 128>}, {transform_indices = @transform_2, window_bounds = array<i64: 1, 128>}, {transform_indices = @transform_3, window_bounds = array<i64: 16, 128>}]} {
    %c0_i32 = arith.constant 0 : i32
    %0 = arith.cmpi eq, %arg2, %c0_i32 : i32
    %1 = arith.extui %0 : i1 to i32
    %c0_i32_0 = arith.constant 0 : i32
    %2 = arith.cmpi ne, %1, %c0_i32_0 : i32
    scf.if %2 {
      %cst_10 = arith.constant 0.000000e+00 : f32
      %12 = vector.broadcast %cst_10 : f32 to vector<16x128xf32>
      %c0_11 = arith.constant 0 : index
      %c0_12 = arith.constant 0 : index
      %13 = vector.load %arg7[%c0_11, %c0_12] : memref<16x128xf32, #tpu.memory_space<vmem>>, vector<16x128xf32>
      tpu.vector_store %arg7[%c0_11, %c0_12], %12 {strides = array<i32>} : memref<16x128xf32, #tpu.memory_space<vmem>>, vector<16x128xf32>,
    } else {
    }
    %c0 = arith.constant 0 : index
    %c0_1 = arith.constant 0 : index
    %3 = vector.load %arg7[%c0, %c0_1] : memref<16x128xf32, #tpu.memory_space<vmem>>, vector<16x128xf32>
    %c0_2 = arith.constant 0 : index
    %c0_3 = arith.constant 0 : index
    %4 = vector.load %arg3[%c0_2, %c0_3] : memref<16x32xbf16, #tpu.memory_space<vmem>>, vector<16x32xbf16>
    %c0_4 = arith.constant 0 : index
    %c0_5 = arith.constant 0 : index
    %5 = vector.load %arg4[%c0_4, %c0_5] : memref<32x128xbf16, #tpu.memory_space<vmem>>, vector<32x128xbf16>
    %cst = arith.constant dense<0.000000e+00> : vector<16x128xf32>
    %6 = tpu.matmul %4, %5, %cst {dimension_numbers = #tpu.dot_dimension_numbers<[1], [0], [0], [1], [0, 0, 1, 1], [], []>} : vector<16x32xbf16>, vector<32x128xbf16>, vector<16x128xf32> -> vector<16x128xf32>
    %7 = arith.addf %3, %6 : vector<16x128xf32>
    %c0_6 = arith.constant 0 : index
    %c0_7 = arith.constant 0 : index
    %8 = vector.load %arg7[%c0_6, %c0_7] : memref<16x128xf32, #tpu.memory_space<vmem>>, vector<16x128xf32>
    tpu.vector_store %arg7[%c0_6, %c0_7], %7 {strides = array<i32>} : memref<16x128xf32, #tpu.memory_space<vmem>>, vector<16x128xf32>,
    %c0_i32_8 = arith.constant 0 : i32
    %9 = arith.cmpi eq, %arg2, %c0_i32_8 : i32
    %10 = arith.extui %9 : i1 to i32
    %c0_i32_9 = arith.constant 0 : i32
    %11 = arith.cmpi ne, %10, %c0_i32_9 : i32
    scf.if %11 {
      %c0_10 = arith.constant 0 : index
      %c0_11 = arith.constant 0 : index
      %12 = vector.load %arg7[%c0_10, %c0_11] : memref<16x128xf32, #tpu.memory_space<vmem>>, vector<16x128xf32>
      %c0_12 = arith.constant 0 : index
      %c0_13 = arith.constant 0 : index
      %13 = vector.load %arg5[%c0_12, %c0_13] : memref<1x128xf32, #tpu.memory_space<vmem>>, vector<1x128xf32>
      %14 = vector.broadcast %13 : vector<1x128xf32> to vector<16x128xf32>
      %15 = arith.addf %12, %14 : vector<16x128xf32>
      %c0_14 = arith.constant 0 : index
      %c0_15 = arith.constant 0 : index
      %16 = vector.load %arg6[%c0_14, %c0_15] : memref<16x128xf32, #tpu.memory_space<vmem>>, vector<16x128xf32>
      tpu.vector_store %arg6[%c0_14, %c0_15], %15 {strides = array<i32>} : memref<16x128xf32, #tpu.memory_space<vmem>>, vector<16x128xf32>,
    } else {
    }
    return
  }
  func.func @transform_0(%arg0: i32, %arg1: i32, %arg2: i32) -> (i32, i32) {
    %c0_i32 = arith.constant 0 : i32
    return %arg0, %arg2 : i32, i32
  }
  func.func @transform_1(%arg0: i32, %arg1: i32, %arg2: i32) -> (i32, i32) {
    %c0_i32 = arith.constant 0 : i32
    return %arg2, %arg1 : i32, i32
  }
  func.func @transform_2(%arg0: i32, %arg1: i32, %arg2: i32) -> (i32, i32) {
    %c0_i32 = arith.constant 0 : i32
    %c0_i32_0 = arith.constant 0 : i32
    return %c0_i32, %arg1 : i32, i32
  }
  func.func @transform_3(%arg0: i32, %arg1: i32, %arg2: i32) -> (i32, i32) {
    %c0_i32 = arith.constant 0 : i32
    return %arg0, %arg1 : i32, i32
  }
}

</mosaic_0001>

<bundles_post_ra>
// kernel: tpu_custom_call.1
= control target key start
LH: loop header
LB: loop body
LE: loop exit
PB: predicated region body
PF: predicated region fallthrough
CT: control target
= control target key end

     0   :  { %8 = vsyncpa [#allocation4], 0  ;;  %s326_s0 = inlined_call_operand.hbm [shape: bf16[16,32], index: 0, kind: input, shape index: {}]   ;;  %s327_s1 = inlined_call_operand.hbm [shape: bf16[32,128], index: 1, kind: input, shape index: {}]   ;;  %s328_s2 = inlined_call_operand.vmem [shape: f32[1,128], index: 2, kind: input, shape index: {}]   ;;  %s329_s3 = inlined_call_operand.hbm [shape: f32[16,128], index: 3, kind: output, shape index: {}]  }
   0x1   :  { %9 = vsyncpa [#allocation7], 0 }
   0x2   :  { %10 = vsyncpa [#allocation5], 0  ;;  %s258_s12 = smov [#allocation3]   ;;  %s186_s16 = scalar_lea.hbm %s326_s0, 128 }
   0x3   :  { %s16_s13 = sshll.u32 %s258_s12, 4  ;;  %p187_p0 = scmp.ne.s32.totalorder %s326_s0, %s186_s16  ;;  %s17_s13 = int_to_ptr.vmem [resolvable:$true] %s16_s13 }
   0x4   :  { %p190_p1 = scmp.lt.u32.totalorder %s186_s16, %s326_s0 }
   0x6   :  { %p192_p2 = pnand %p190_p1, %p187_p0 }
   0x8   :  { %195 = shalt.err (!%p192_p2)
}
   0x9   :  { %s196_s21 = scalar_lea.vmem %s17_s13, 128  ;;  %p201_p4 = scmp.lt.s32.totalorder %s17_s13, %s17_s13 }
   0xa   :  { %p197_p3 = scmp.ne.s32.totalorder %s17_s13, %s196_s21  ;;  %p202_p5 = scmp.lt.s32.totalorder %s196_s21, %s196_s21 }
   0xc   :  { %p203_p6 = por %p202_p5, %p201_p4 }
   0xe   :  { %p204_p7 = pnand %p203_p6, %p197_p3 }
  0x10   :  { %207 = shalt.err (!%p204_p7)
}
  0x11   :  { %s259_s22 = smov 64   ;;  %s260_s23 = smov 4  }
  0x12   :  { %22 = dma.hbm_to_vmem [thread:$0]  %s326_s0, 128, %s17_s13, [#allocation4], %s259_s22, %s259_s22, %s260_s23  }
  0x13   :  { %s261_s26 = smov [#allocation6]   ;;  %s208_s30 = scalar_lea.hbm %s327_s1, 256 }
  0x14   :  { %s28_s27 = sshll.u32 %s261_s26, 4  ;;  %p209_p8 = scmp.ne.s32.totalorder %s327_s1, %s208_s30  ;;  %s29_s27 = int_to_ptr.vmem [resolvable:$true] %s28_s27 }
  0x15   :  { %p212_p9 = scmp.lt.u32.totalorder %s208_s30, %s327_s1 }
  0x17   :  { %p214_p10 = pnand %p212_p9, %p209_p8 }
  0x19   :  { %217 = shalt.err (!%p214_p10)
}
  0x1a   :  { %s218_s8 = scalar_lea.vmem %s29_s27, 256  ;;  %p223_p12 = scmp.lt.s32.totalorder %s29_s27, %s29_s27 }
  0x1b   :  { %p219_p11 = scmp.ne.s32.totalorder %s29_s27, %s218_s8  ;;  %p224_p13 = scmp.lt.s32.totalorder %s218_s8, %s218_s8 }
  0x1d   :  { %p225_p0 = por %p224_p13, %p223_p12 }
  0x1f   :  { %p226_p1 = pnand %p225_p0, %p219_p11 }
  0x21   :  { %229 = shalt.err (!%p226_p1)
}
  0x22   :  { %34 = dma.hbm_to_vmem [thread:$0]  %s327_s1, 256, %s29_s27, [#allocation7], %s259_s22, %s259_s22, %s260_s23  }
  0x23   :  { %252 = dma.done.wait [#allocation4], 128  }
  0x24   :  { %253 = vsyncadd [#allocation4], 4294967168 }
  0x25   :  { %254 = dma.done.wait [#allocation7], 256  }
  0x26   :  { %255 = vsyncadd [#allocation7], 4294967040  ;;  %v262_v0 = vmov 0.0   ;;  %vm263_vm0 = vmmov 0   ;;  %v183_v1 = vld [vmem:[#allocation6] sm:$0xff]   ;;  %v184_v2 = vld [vmem:[#allocation6 + $0x8] sm:$0xff]  }
  0x27   :  { %166 = vmatprep.subr.bf16.mxu0 %v262_v0  ;;  %170 = vmatprep.mubr.msk.bf16.mxu0 %vm263_vm0, %v262_v0  ;;  %v185_v3 = vld [vmem:[#allocation3] sm:$0xff]   ;;  %vm75_vm1 = vcmask 261120   ;;  %s264_s1 = smov [#allocation8]  }
  0x28   :  { %167 = vmatpush3.bf16.msra.mxu0 %v183_v1  ;;  %v162_v4 = vld [vmem:[%s328_s2] ss:$0 sm:$0xff]  ;;  %s145_s12 = sshll.u32 %s264_s1, 4  ;;  %s146_s12 = int_to_ptr.vmem [resolvable:$true] %s145_s12 }
  0x29   :  { %168 = vmatprep.subr.bf16.mxu0 %v262_v0  ;;  %s230_s13 = scalar_lea.vmem %s146_s12, 256  ;;  %p235_p3 = scmp.lt.s32.totalorder %s146_s12, %s146_s12 }
  0x2a   :  { %p231_p2 = scmp.ne.s32.totalorder %s146_s12, %s230_s13  ;;  %p236_p4 = scmp.lt.s32.totalorder %s230_s13, %s230_s13 }
  0x2c   :  { %169 = vmatpush3.bf16.msra.mxu0 %v184_v2  ;;  %p237_p5 = por %p236_p4, %p235_p3 }
  0x2e   :  { %p238_p6 = pnand %p237_p5, %p231_p2 }
  0x2f   :  { %171 = vmatmul.mubr.msk.bf16.vlgmr.msra.gmra.mrb[0].mxu0 %vm75_vm1, %v185_v3 }
 0x102   :  { %v113_v5 = vpop.f32.mrb[0].mxu0 }
 0x103   :  { %v136_v6 = vadd.f32 %v162_v4, %v113_v5  ;;  %v172_v7 = vpop.f32.mrb[1].mxu0 }
 0x104   :  { %v116_v8 = vpop.f32.mrb[2].mxu0 }
 0x105   :  { %138 = vst [vmem:[#allocation8] sm:$0xff] %v136_v6  ;;  %v137_v9 = vadd.f32 %v162_v4, %v116_v8  ;;  %v173_v10 = vpop.f32.mrb[3].mxu0 }
 0x107   :  { %139 = vst [vmem:[#allocation8 + $0x8] sm:$0xff] %v137_v9 }
 0x108   :  { %241 = shalt.err (!%p238_p6)
}
 0x109   :  { %s242_s15 = scalar_lea.hbm %s329_s3, 256 }
 0x10a   :  { %p243_p7 = scmp.ne.s32.totalorder %s329_s3, %s242_s15  ;;  %p246_p8 = scmp.lt.u32.totalorder %s242_s15, %s329_s3 }
 0x10c   :  { %p248_p9 = pnand %p246_p8, %p243_p7 }
 0x10e   :  { %251 = shalt.err (!%p248_p9)
}
 0x10f   :  { %s265_s20 = smov 128   ;;  %s266_s21 = smov 8  }
 0x110   :  { %151 = dma.vmem_to_hbm [thread:$0]  %s146_s12, 256, %s329_s3, [#allocation5], %s265_s20, %s265_s20, %s266_s21  }
 0x111   :  { %256 = dma.done.wait [#allocation5], 256  }
 0x112   :  { %257 = vsyncadd [#allocation5], 4294967040 }
 0x113   :  { %155 = vsyncpa [#allocation4], 1 }
 0x114   :  { %156 = vsyncpa [#allocation7], 1 }
 0x115   :  { %157 = vsyncpa [#allocation5], 1 }

</bundles_post_ra>
